<compile_context>
chip_gen: v7x
topology: tpu7x:2x2x1
jax: 0.10.0
libtpu: 0.0.40
codegen_flags: <defaults>
</compile_context>

<pallas_src>
import functools

import jax
import jax.numpy as jnp
from jax.experimental import pallas as pl
from jax.experimental.pallas import tpu as pltpu

LANES = 128   # padded hidden / output width (lane-dense); lane 127 = bias lane


def _round_up(n: int, m: int) -> int:
    return (n + m - 1) // m * m


def a2c_fused_kernel(x_ref, w_ref, o_ref):
    """One batch tile: 3 fused matmuls + 2 ReLUs, single lane-dense store.

    Biases are pre-folded into the weights via the constant-1 bias lane,
    so there are no separate bias loads/adds in the body.
    """
    f = x_ref.shape[1]                       # padded feature dim (static)
    x = x_ref[...]                           # (TB, Fp) f32

    w1 = w_ref[0:f, :]                       # (Fp, 128)  fused layer-1 (+b1 row)
    w2 = w_ref[f:f + LANES, :]               # (128, 128) block-diag layer 2 (+b2 row)
    w3 = w_ref[f + LANES:f + 2 * LANES, :]   # (128, 128) block-diag layer 3 (+b3 row)

    h = jnp.maximum(jnp.dot(x, w1, preferred_element_type=jnp.float32), 0.0)
    h = jnp.maximum(jnp.dot(h, w2, preferred_element_type=jnp.float32), 0.0)
    o_ref[...] = jnp.dot(h, w3, preferred_element_type=jnp.float32)


def _choose_batch_tiling(B: int, tile_b: int):
    """Pick (tile rows, padded batch, n_tiles) with <=7 padding rows per tile
    count and an even tile count when B is big enough for v7x's 2 TCs."""
    n_tiles = max(1, -(-B // tile_b))
    if B >= 2048 and n_tiles % 2 == 1:       # dual-TC split only when worth a step
        n_tiles += 1
    tb = _round_up(-(-B // n_tiles), 8)
    return tb, tb * n_tiles, n_tiles


@functools.partial(jax.jit, static_argnames=("n_actions", "tile_b"))
def a2c_forward(x, slab, *, n_actions, tile_b=2048):
    """x: (B, F) f32. slab: packed params (Fp + 256, 128) from pack_params.

    Returns (state_values (B, 1), action_logits (B, n_actions))."""
    B, F = x.shape
    Fp = slab.shape[0] - 2 * LANES
    assert F + 1 <= Fp, "x has more features than the slab was packed for"

    tb, Bp, n_tiles = _choose_batch_tiling(B, tile_b)

    # Widen features: real features, zero padding, constant-1 bias column at Fp-1.
    cols = [x]
    if Fp - 1 > F:
        cols.append(jnp.zeros((B, Fp - 1 - F), jnp.float32))
    cols.append(jnp.ones((B, 1), jnp.float32))
    xp = jnp.concatenate(cols, axis=1)
    if Bp > B:                                # pad rows only when needed
        xp = jnp.concatenate([xp, jnp.zeros((Bp - B, Fp), jnp.float32)], axis=0)

    out = pl.pallas_call(
        a2c_fused_kernel,
        out_shape=jax.ShapeDtypeStruct((Bp, LANES), jnp.float32),
        grid_spec=pltpu.PrefetchScalarGridSpec(
            num_scalar_prefetch=0,
            grid=(n_tiles,),
            in_specs=[
                pl.BlockSpec((tb, Fp), lambda i: (i, 0)),     # stream batch tiles
                pl.BlockSpec(slab.shape, lambda i: (0, 0)),   # weights VMEM-resident
            ],
            out_specs=pl.BlockSpec((tb, LANES), lambda i: (i, 0)),
        ),
        compiler_params=pltpu.CompilerParams(
            dimension_semantics=("parallel",),
        ),
    )(xp, slab)

    state_values = out[:B, 0:1]
    action_logits = out[:B, 1:1 + n_actions]
    return state_values, action_logits


def init_params(key, n_features, n_actions, hidden=10):
    """Deterministic synthetic init, PyTorch Linear-style. Weights (in, out)."""
    ks = jax.random.split(key, 12)

    def lin(kw, kb, fan_in, fan_out):
        bound = 1.0 / jnp.sqrt(jnp.float32(fan_in))
        w = jax.random.uniform(kw, (fan_in, fan_out), jnp.float32, -bound, bound)
        b = jax.random.uniform(kb, (1, fan_out), jnp.float32, -bound, bound)
        return w, b

    cw1, cb1 = lin(ks[0], ks[1], n_features, hidden)
    cw2, cb2 = lin(ks[2], ks[3], hidden, hidden)
    cw3, cb3 = lin(ks[4], ks[5], hidden, 1)
    aw1, ab1 = lin(ks[6], ks[7], n_features, hidden)
    aw2, ab2 = lin(ks[8], ks[9], hidden, hidden)
    aw3, ab3 = lin(ks[10], ks[11], hidden, n_actions)
    return (cw1, cb1, cw2, cb2, cw3, cb3, aw1, ab1, aw2, ab2, aw3, ab3)


def pack_params(params, n_features, n_actions, hidden=10):
    """Pack the 12 arrays into one (Fp + 256, 128) f32 slab, biases folded in.

    Row layout:
      [0, n_features)   : layer-1 weights, cols [0,H)=critic, [H,2H)=actor
      Fp-1              : layer-1 biases; lane 127 = 1.0 (constant bias lane)
      [Fp, Fp+128)      : layer-2 block-diag weights; row 127 = biases,
                          [127,127] = 1.0 (carries the constant lane forward)
      [Fp+128, Fp+256)  : layer-3 block-diag weights; row 127 = biases
                          (col 0 = value, cols 1..1+A = logits)
    All padding is exact zeros, so the fused math equals the unfused reference
    (the wrapper feeds x with a constant-1 feature at column Fp-1).
    """
    (cw1, cb1, cw2, cb2, cw3, cb3, aw1, ab1, aw2, ab2, aw3, ab3) = params
    H = hidden
    H2 = 2 * hidden
    assert H2 < LANES and (1 + n_actions) <= LANES
    Fp = _round_up(n_features + 1, 8)

    w1 = jnp.zeros((Fp, LANES), jnp.float32)
    w1 = w1.at[:n_features, :H].set(cw1).at[:n_features, H:H2].set(aw1)
    w1 = (w1.at[Fp - 1, :H].set(cb1[0])
             .at[Fp - 1, H:H2].set(ab1[0])
             .at[Fp - 1, LANES - 1].set(1.0))

    w2 = jnp.zeros((LANES, LANES), jnp.float32)
    w2 = w2.at[:H, :H].set(cw2).at[H:H2, H:H2].set(aw2)
    w2 = (w2.at[LANES - 1, :H].set(cb2[0])
             .at[LANES - 1, H:H2].set(ab2[0])
             .at[LANES - 1, LANES - 1].set(1.0))

    w3 = jnp.zeros((LANES, LANES), jnp.float32)
    w3 = w3.at[:H, 0:1].set(cw3).at[H:H2, 1:1 + n_actions].set(aw3)
    w3 = (w3.at[LANES - 1, 0:1].set(cb3[0])
             .at[LANES - 1, 1:1 + n_actions].set(ab3[0]))

    return jnp.concatenate([w1, w2, w3], axis=0)


def a2c_forward_ref(x, params):
    """Pure-JAX reference of the original (unfused) forward pass."""
    (cw1, cb1, cw2, cb2, cw3, cb3, aw1, ab1, aw2, ab2, aw3, ab3) = params
    h = jnp.maximum(x @ cw1 + cb1, 0.0)
    h = jnp.maximum(h @ cw2 + cb2, 0.0)
    v = h @ cw3 + cb3
    g = jnp.maximum(x @ aw1 + ab1, 0.0)
    g = jnp.maximum(g @ aw2 + ab2, 0.0)
    logits = g @ aw3 + ab3
    return v, logits


# TODO(synk): select_action (Categorical sampling) and get_losses (GAE loop /
# RMSprop update) are training-side host logic, not part of the forward pass
# kernel; they remain in plain JAX if needed.

if __name__ == "__main__":
    key = jax.random.PRNGKey(0)
    k_params, k_x, k_x2 = jax.random.split(key, 3)

    batch = 8          # small stand-in for n_envs
    n_features = 16
    n_actions = 6      # Galaxian action space
    hidden = 10

    params = init_params(k_params, n_features, n_actions, hidden)
    slab = pack_params(params, n_features, n_actions, hidden)

    # Small batch: single grid step.
    x = jax.random.normal(k_x, (batch, n_features), jnp.float32)
    state_values, action_logits = a2c_forward(x, slab, n_actions=n_actions)
    jax.block_until_ready((state_values, action_logits))

    v_ref, l_ref = a2c_forward_ref(x, params)
    assert state_values.shape == (batch, 1)
    assert action_logits.shape == (batch, n_actions)
    assert jnp.allclose(state_values, v_ref, atol=1e-4, rtol=1e-4)
    assert jnp.allclose(action_logits, l_ref, atol=1e-4, rtol=1e-4)

    # Rollout-sized batch (n_envs=500): exercises multi-tile grid + row padding.
    x2 = jax.random.normal(k_x2, (500, n_features), jnp.float32)
    v2, l2 = a2c_forward(x2, slab, n_actions=n_actions, tile_b=128)
    jax.block_until_ready((v2, l2))
    v2_ref, l2_ref = a2c_forward_ref(x2, params)
    assert v2.shape == (500, 1) and l2.shape == (500, n_actions)
    assert jnp.allclose(v2, v2_ref, atol=1e-4, rtol=1e-4)
    assert jnp.allclose(l2, l2_ref, atol=1e-4, rtol=1e-4)

    print("KERNEL_OK")
</pallas_src>

<mosaic_0001>
module attributes {stable_mosaic.version = 11 : i64} {
  func.func @a2c_fused_kernel(%arg0: i32, %arg1: memref<8x24xf32, #tpu.memory_space<vmem>>, %arg2: memref<280x128xf32, #tpu.memory_space<vmem>>, %arg3: memref<8x128xf32, #tpu.memory_space<vmem>>) attributes {dimension_semantics = [#tpu.dimension_semantics<parallel>], iteration_bounds = array<i64: 1>, scalar_prefetch = 0 : i64, scratch_operands = 0 : i64, tpu.core_type = #tpu.core_type<tc>, window_params = [{transform_indices = @transform_0, window_bounds = array<i64: 8, 24>}, {pipeline_mode = #tpu.pipeline_mode<synchronous>, transform_indices = @transform_1, window_bounds = array<i64: 280, 128>}, {transform_indices = @transform_2, window_bounds = array<i64: 8, 128>}]} {
    %c0 = arith.constant 0 : index
    %c0_0 = arith.constant 0 : index
    %0 = vector.load %arg1[%c0, %c0_0] : memref<8x24xf32, #tpu.memory_space<vmem>>, vector<8x24xf32>
    %c0_1 = arith.constant 0 : index
    %c0_2 = arith.constant 0 : index
    %1 = vector.load %arg2[%c0_1, %c0_2] : memref<280x128xf32, #tpu.memory_space<vmem>>, vector<24x128xf32>
    %c24 = arith.constant 24 : index
    %c0_3 = arith.constant 0 : index
    %2 = vector.load %arg2[%c24, %c0_3] : memref<280x128xf32, #tpu.memory_space<vmem>>, vector<128x128xf32>
    %c152 = arith.constant 152 : index
    %c0_4 = arith.constant 0 : index
    %3 = vector.load %arg2[%c152, %c0_4] : memref<280x128xf32, #tpu.memory_space<vmem>>, vector<128x128xf32>
    %cst = arith.constant dense<0.000000e+00> : vector<8x128xf32>
    %4 = tpu.matmul %0, %1, %cst {dimension_numbers = #tpu.dot_dimension_numbers<[1], [0], [0], [1], [0, 0, 1, 1], [], []>} : vector<8x24xf32>, vector<24x128xf32>, vector<8x128xf32> -> vector<8x128xf32>
    %cst_5 = arith.constant 0.000000e+00 : f32
    %5 = vector.broadcast %cst_5 : f32 to vector<8x128xf32>
    %6 = arith.maximumf %4, %5 : vector<8x128xf32>
    %cst_6 = arith.constant dense<0.000000e+00> : vector<8x128xf32>
    %7 = tpu.matmul %6, %2, %cst_6 {dimension_numbers = #tpu.dot_dimension_numbers<[1], [0], [0], [1], [0, 0, 1, 1], [], []>} : vector<8x128xf32>, vector<128x128xf32>, vector<8x128xf32> -> vector<8x128xf32>
    %cst_7 = arith.constant 0.000000e+00 : f32
    %8 = vector.broadcast %cst_7 : f32 to vector<8x128xf32>
    %9 = arith.maximumf %7, %8 : vector<8x128xf32>
    %cst_8 = arith.constant dense<0.000000e+00> : vector<8x128xf32>
    %10 = tpu.matmul %9, %3, %cst_8 {dimension_numbers = #tpu.dot_dimension_numbers<[1], [0], [0], [1], [0, 0, 1, 1], [], []>} : vector<8x128xf32>, vector<128x128xf32>, vector<8x128xf32> -> vector<8x128xf32>
    %c0_9 = arith.constant 0 : index
    %c0_10 = arith.constant 0 : index
    %11 = vector.load %arg3[%c0_9, %c0_10] : memref<8x128xf32, #tpu.memory_space<vmem>>, vector<8x128xf32>
    tpu.vector_store %arg3[%c0_9, %c0_10], %10 {strides = array<i32>} : memref<8x128xf32, #tpu.memory_space<vmem>>, vector<8x128xf32>,
    return
  }
  func.func @transform_0(%arg0: i32) -> (i32, i32) {
    %c0_i32 = arith.constant 0 : i32
    %c0_i32_0 = arith.constant 0 : i32
    return %arg0, %c0_i32 : i32, i32
  }
  func.func @transform_1(%arg0: i32) -> (i32, i32) {
    %c0_i32 = arith.constant 0 : i32
    %c0_i32_0 = arith.constant 0 : i32
    %c0_i32_1 = arith.constant 0 : i32
    return %c0_i32, %c0_i32_0 : i32, i32
  }
  func.func @transform_2(%arg0: i32) -> (i32, i32) {
    %c0_i32 = arith.constant 0 : i32
    %c0_i32_0 = arith.constant 0 : i32
    return %arg0, %c0_i32 : i32, i32
  }
}

</mosaic_0001>

<bundles_post_ra>
// kernel: a2c_forward.1
= control target key start
LH: loop header
LB: loop body
LE: loop exit
PB: predicated region body
PF: predicated region fallthrough
CT: control target
= control target key end

     0   :  { %7 = vsyncpa [#allocation3], 0  ;;  %s482_s9 = smov [#allocation2]   ;;  %s541_s0 = inlined_call_operand.vmem [shape: f32[8,24], index: 0, kind: input, shape index: {}]   ;;  %s542_s1 = inlined_call_operand.hbm [shape: f32[280,128], index: 1, kind: input, shape index: {}]   ;;  %s543_s2 = inlined_call_operand.vmem [shape: f32[8,128], index: 2, kind: output, shape index: {}]  }
   0x1   :  { %s15_s10 = sshll.u32 %s482_s9, 4  ;;  %s458_s13 = scalar_lea.hbm %s542_s1, 4480  ;;  %s16_s10 = int_to_ptr.vmem [resolvable:$true] %s15_s10 }
   0x2   :  { %p459_p0 = scmp.ne.s32.totalorder %s542_s1, %s458_s13  ;;  %p462_p1 = scmp.lt.u32.totalorder %s458_s13, %s542_s1 }
   0x4   :  { %p464_p2 = pnand %p462_p1, %p459_p0 }
   0x6   :  { %467 = shalt.err (!%p464_p2)
}
   0x7   :  { %s468_s18 = scalar_lea.vmem %s16_s10, 4480  ;;  %p473_p4 = scmp.lt.s32.totalorder %s16_s10, %s16_s10 }
   0x8   :  { %p469_p3 = scmp.ne.s32.totalorder %s16_s10, %s468_s18  ;;  %p474_p5 = scmp.lt.s32.totalorder %s468_s18, %s468_s18 }
   0xa   :  { %p475_p6 = por %p474_p5, %p473_p4 }
   0xc   :  { %p476_p7 = pnand %p475_p6, %p469_p3 }
   0xe   :  { %479 = shalt.err (!%p476_p7)
}
   0xf   :  { %s483_s19 = smov 128   ;;  %s484_s20 = smov 8  }
  0x10   :  { %21 = dma.hbm_to_vmem [thread:$0]  %s542_s1, 4480, %s16_s10, [#allocation3], %s483_s19, %s483_s19, %s484_s20  }
  0x11   :  { %480 = dma.done.wait [#allocation3], 4480  }
  0x12   :  { %481 = vsyncadd [#allocation3], 4294962816  ;;  %v485_v0 = vmov 0.0|0.0   ;;  %vm486_vm0 = vmmov 0   ;;  %v487_v1 = vmov 0.0   ;;  %v26_v2 = vld [vmem:[#allocation2] sm:$0xff] }
  0x13   :  { %401 = vmatprep.subr.bf16.mxu0 %v485_v0  ;;  %328 = vmatprep.mubr.msk.f32.mxu0 %vm486_vm0, %v487_v1  ;;  %v27_v3 = vld [vmem:[#allocation2 + $0x8] sm:$0xff]  ;;  %v29_v5 = vld [vmem:[#allocation2 + $0x18] sm:$0xff]  ;;  %v30_v6 = vld [vmem:[#allocation2 + $0x20] sm:$0xff]  ;;  %vm61_vm1 = vcmask 195584  }
  0x14   :  { %404 = vmatprep.subr.bf16.mxu1 %v485_v0  ;;  %363 = vmatprep.mubr.msk.f32.mxu1 %vm486_vm0, %v487_v1  ;;  %v402_v4 = vpack.c.bf16 %v27_v3, %v26_v2  ;;  %v405_v7 = vpack.c.bf16 %v30_v6, %v29_v5  ;;  %v31_v8 = vld [vmem:[#allocation2 + $0x28] sm:$0xff]  ;;  %v32_v9 = vld [vmem:[#allocation2 + $0x30] sm:$0xff]  ;;  %v25_v12 = vld [vmem:[%s541_s0] sm:$0xff] }
  0x15   :  { %v28_v10 = vld [vmem:[#allocation2 + $0x10] sm:$0xff]  ;;  %v408_v11 = vpack.c.bf16 %v32_v9, %v31_v8  ;;  %v33_v13 = vld [vmem:[#allocation2 + $0x38] sm:$0xff]  ;;  %v34_v14 = vld [vmem:[#allocation2 + $0x40] sm:$0xff] }
  0x16   :  { %403 = vmatpush3.bf16.msra.mxu0 %v402_v4  ;;  %406 = vmatpush3.bf16.msra.mxu1 %v405_v7  ;;  %v411_v15 = vpack.c.bf16 %v34_v14, %v33_v13  ;;  %v35_v16 = vld [vmem:[#allocation2 + $0x48] sm:$0xff]  ;;  %v36_v17 = vld [vmem:[#allocation2 + $0x50] sm:$0xff]  ;;  %v37_v19 = vld [vmem:[#allocation2 + $0x58] sm:$0xff] }
  0x17   :  { %326 = vmatprep.subr.mxu0 %v487_v1  ;;  %407 = vmatprep.subr.bf16.mxu1 %v485_v0  ;;  %v414_v18 = vpack.c.bf16 %v36_v17, %v35_v16  ;;  %v38_v20 = vld [vmem:[#allocation2 + $0x60] sm:$0xff]  ;;  %v39_v22 = vld [vmem:[#allocation2 + $0x68] sm:$0xff]  ;;  %v40_v23 = vld [vmem:[#allocation2 + $0x70] sm:$0xff] }
  0x18   :  { %v417_v21 = vpack.c.bf16 %v38_v20, %v37_v19  ;;  %v420_v24 = vpack.c.bf16 %v40_v23, %v39_v22  ;;  %v41_v25 = vld [vmem:[#allocation2 + $0x78] sm:$0xff]  ;;  %v42_v26 = vld [vmem:[#allocation2 + $0x80] sm:$0xff]  ;;  %v43_v28 = vld [vmem:[#allocation2 + $0x88] sm:$0xff] }
  0x19   :  { %v423_v27 = vpack.c.bf16 %v42_v26, %v41_v25  ;;  %v44_v29 = vld [vmem:[#allocation2 + $0x90] sm:$0xff]  ;;  %v45_v31 = vld [vmem:[#allocation2 + $0x98] sm:$0xff]  ;;  %v46_v32 = vld [vmem:[#allocation2 + $0xa0] sm:$0xff] }
  0x1a   :  { %327 = vmatpush3.msra.mxu0 %v28_v10  ;;  %409 = vmatpush3.bf16.msra.mxu1 %v408_v11  ;;  %v426_v30 = vpack.c.bf16 %v44_v29, %v43_v28  ;;  %v47_v33 = vld [vmem:[#allocation2 + $0xa8] sm:$0xff]  ;;  %v429_v34 = vpack.c.bf16 %v46_v32, %v45_v31  ;;  %v48_v35 = vld [vmem:[#allocation2 + $0xb0] sm:$0xff]  ;;  %v49_v37 = vld [vmem:[#allocation2 + $0xb8] sm:$0xff] }
  0x1b   :  { %329 = vmatmul.mubr.msk.f32.vlgmr.msra.gmra.mrb[0].mxu0 %vm61_vm1, %v25_v12  ;;  %410 = vmatprep.subr.bf16.mxu1 %v485_v0  ;;  %v432_v36 = vpack.c.bf16 %v48_v35, %v47_v33  ;;  %v50_v38 = vld [vmem:[#allocation2 + $0xc0] sm:$0xff]  ;;  %v51_v40 = vld [vmem:[#allocation2 + $0xc8] sm:$0xff]  ;;  %v52_v41 = vld [vmem:[#allocation2 + $0xd0] sm:$0xff] }
  0x1c   :  { %428 = vmatprep.subr.bf16.mxu0 %v485_v0  ;;  %398 = vmatprep.mubr.msk.f32.mxu0 %vm486_vm0, %v487_v1  ;;  %v435_v39 = vpack.c.bf16 %v50_v38, %v49_v37  ;;  %v438_v42 = vpack.c.bf16 %v52_v41, %v51_v40  ;;  %v53_v43 = vld [vmem:[#allocation2 + $0xd8] sm:$0xff]  ;;  %v54_v44 = vld [vmem:[#allocation2 + $0xe0] sm:$0xff]  ;;  %v55_v46 = vld [vmem:[#allocation2 + $0xe8] sm:$0xff] }
  0x1d   :  { %430 = vmatpush3.bf16.msra.mxu0 %v429_v34  ;;  %v441_v45 = vpack.c.bf16 %v54_v44, %v53_v43  ;;  %v56_v47 = vld [vmem:[#allocation2 + $0xf0] sm:$0xff]  ;;  %v57_v49 = vld [vmem:[#allocation2 + $0xf8] sm:$0xff]  ;;  %v58_v50 = vld [vmem:[#allocation2 + $0x100] sm:$0xff] }
  0x1e   :  { %412 = vmatpush3.bf16.msra.mxu1 %v411_v15  ;;  %431 = vmatprep.subr.bf16.mxu0 %v485_v0  ;;  %v444_v48 = vpack.c.bf16 %v56_v47, %v55_v46  ;;  %v447_v51 = vpack.c.bf16 %v58_v50, %v57_v49  ;;  %v59_v55 = vld [vmem:[#allocation2 + $0x108] sm:$0xff]  ;;  %v60_v56 = vld [vmem:[#allocation2 + $0x110] sm:$0xff] }
  0x1f   :  { %413 = vmatprep.subr.bf16.mxu1 %v485_v0  ;;  %v450_v57 = vpack.c.bf16 %v60_v56, %v59_v55 }
  0x21   :  { %433 = vmatpush3.bf16.msra.mxu0 %v432_v36 }
  0x22   :  { %415 = vmatpush3.bf16.msra.mxu1 %v414_v18  ;;  %434 = vmatprep.subr.bf16.mxu0 %v485_v0 }
  0x23   :  { %416 = vmatprep.subr.bf16.mxu1 %v485_v0 }
  0x25   :  { %436 = vmatpush3.bf16.msra.mxu0 %v435_v39 }
  0x26   :  { %418 = vmatpush3.bf16.msra.mxu1 %v417_v21  ;;  %437 = vmatprep.subr.bf16.mxu0 %v485_v0 }
  0x27   :  { %419 = vmatprep.subr.bf16.mxu1 %v485_v0 }
  0x29   :  { %439 = vmatpush3.bf16.msra.mxu0 %v438_v42 }
  0x2a   :  { %421 = vmatpush3.bf16.msra.mxu1 %v420_v24  ;;  %440 = vmatprep.subr.bf16.mxu0 %v485_v0 }
  0x2b   :  { %422 = vmatprep.subr.bf16.mxu1 %v485_v0 }
  0x2d   :  { %442 = vmatpush3.bf16.msra.mxu0 %v441_v45 }
  0x2e   :  { %424 = vmatpush3.bf16.msra.mxu1 %v423_v27  ;;  %443 = vmatprep.subr.bf16.mxu0 %v485_v0 }
  0x2f   :  { %425 = vmatprep.subr.bf16.mxu1 %v485_v0 }
  0x31   :  { %445 = vmatpush3.bf16.msra.mxu0 %v444_v48 }
  0x32   :  { %427 = vmatpush3.bf16.msra.mxu1 %v426_v30  ;;  %446 = vmatprep.subr.bf16.mxu0 %v485_v0 }
  0x35   :  { %448 = vmatpush3.bf16.msra.mxu0 %v447_v51 }
  0x36   :  { %449 = vmatprep.subr.bf16.mxu0 %v485_v0 }
  0x39   :  { %451 = vmatpush3.bf16.msra.mxu0 %v450_v57 }
  0xee   :  { %v131_v52 = vpop.f32.mrb[0].mxu0 }
  0xef   :  { %v135_v53 = vmax.f32 %v131_v52, 0.0  ;;  %v330_v54 = vpop.f32.mrb[1].mxu0 }
  0xf1   :  { %364 = vmatmul.mubr.f32.vlgmr.msra.gmra.mrb[0].mxu1 %v135_v53 }
 0x1c4   :  { %v202_v58 = vpop.f32.mrb[0].mxu1 }
 0x1c5   :  { %v206_v59 = vmax.f32 %v202_v58, 0.0  ;;  %v365_v60 = vpop.f32.mrb[1].mxu1 }
 0x1c7   :  { %399 = vmatmul.mubr.f32.vlgmr.msra.gmra.mrb[2].mxu0 %v206_v59 }
 0x29a   :  { %v273_v61 = vpop.f32.mrb[2].mxu0 }
 0x29b   :  { %277 = vst [vmem:[%s543_s2] sm:$0xff] %v273_v61  ;;  %v400_v62 = vpop.f32.mrb[3].mxu0 }
 0x29c   :  { %282 = vsyncpa [#allocation3], 1 }

</bundles_post_ra>
